<compile_context>
chip_gen: v6e
topology: v6e:2x2x1
jax: 0.10.0
libtpu: 0.0.40
codegen_flags: <defaults>
</compile_context>

<pallas_src>
import math

import jax
import jax.numpy as jnp
from jax.experimental import pallas as pl
from jax.experimental.pallas import tpu as pltpu


def _build_pe(period: int, embedding_size: int) -> jnp.ndarray:
    """Build the sinusoidal PE buffer exactly like the PyTorch __init__.

    Returns pe with shape [1, embedding_size, period] (after the
    unsqueeze(0).transpose(2, 1) in the reference module).
    """
    position = jnp.arange(period, dtype=jnp.float32)[:, None]                # [P, 1]
    div_term = jnp.exp(
        jnp.arange(0, embedding_size, 2, dtype=jnp.float32)
        * (-math.log(10000.0) / embedding_size)
    )                                                                        # [E/2]
    angles = position * div_term                                             # [P, E/2]
    pe = jnp.zeros((period, embedding_size), dtype=jnp.float32)
    pe = pe.at[:, 0::2].set(jnp.sin(angles))
    pe = pe.at[:, 1::2].set(jnp.cos(angles))
    pe = jnp.transpose(pe[None, :, :], (0, 2, 1))                            # [1, E, P]
    return pe


def _ppe_kernel(alpha_ref, x_ref, pe_ref, o_ref):
    # alpha_ref: SMEM [1] f32; x_ref/o_ref: VMEM [TB, CHUNK] (x dtype);
    # pe_ref: VMEM [1, CHUNK] f32.  Add happens in the promoted (f32) dtype;
    # cast back to the output dtype only at the store.
    alpha = alpha_ref[0]
    o_ref[...] = (x_ref[...] + alpha * pe_ref[...]).astype(o_ref.dtype)


def _cdiv(a: int, b: int) -> int:
    return -(-a // b)


def _tpu_budget():
    """Generation-aware (target_block_bytes, vmem_limit_bytes, num_cores)."""
    vmem_cap = None
    cores = None
    try:
        info = pltpu.get_tpu_info()
        cap = int(getattr(info, "vmem_capacity_bytes", 0))
        vmem_cap = cap if cap > 0 else None
        for name in ("num_cores", "core_count", "num_tensorcores", "tensorcore_count"):
            v = getattr(info, name, None)
            if isinstance(v, int) and v > 0:
                cores = v
                break
    except Exception:
        pass
    if vmem_cap is None:
        vmem_cap = 64 * 1024 * 1024                    # conservative (v7x-sized)
    if cores is None:
        # 64-MiB-VMEM parts (v7x) carry 2 TensorCores per chip; v5e/v6e carry 1.
        cores = 2 if vmem_cap <= 64 * 1024 * 1024 else 1

    if vmem_cap >= 96 * 1024 * 1024:                   # v5e / v6e: 128 MiB physical
        target_block = 8 * 1024 * 1024
        vmem_limit = 64 * 1024 * 1024
    else:                                              # v7x: 64 MiB physical
        target_block = 4 * 1024 * 1024
        vmem_limit = 32 * 1024 * 1024
    return target_block, vmem_limit, cores


def _plan_tiling(B: int, DL: int, itemsize: int, target_block_bytes: int,
                 num_cores: int):
    """Pick (tb, chunk, grid) for blocks of shape (tb, chunk) over [B, DL].

    tb is a multiple of the dtype-native sublane tile (8 f32 / 16 bf16 /
    32 int8) or the full batch extent; chunk is a multiple of 128 lanes or the
    full DL extent.  Ragged last blocks are handled by cdiv grids (Pallas pads).
    """
    lane_tile = 128
    sub = max(8, 32 // max(1, itemsize))               # native sublane tile
    row_bytes = DL * itemsize
    min_rows = min(B, sub)

    if min_rows * row_bytes <= target_block_bytes:
        # Whole rows per block; no lane chunking.
        chunk = DL
        rows_fit = target_block_bytes // row_bytes
        tb = max(min_rows, (rows_fit // sub) * sub)
        if num_cores > 1 and B > sub:
            # Keep the batch grid >= the TensorCore count for a megacore split,
            # without shrinking below one sublane tile.
            per_core = _cdiv(B, num_cores)
            per_core = ((per_core + sub - 1) // sub) * sub
            tb = min(tb, max(per_core, sub))
        if tb >= B:
            tb = B                                     # full extent: always legal
        return tb, chunk, (_cdiv(B, tb), 1)

    # Rows too big for the budget: chunk the lane axis in multiples of 128.
    tb = min_rows                                      # full extent or one sublane tile
    denom = max(tb * itemsize, 4)                      # also bounds the f32 pe chunk
    chunk = (target_block_bytes // denom // lane_tile) * lane_tile
    chunk = max(lane_tile, min(chunk, DL))
    return tb, chunk, (_cdiv(B, tb), _cdiv(DL, chunk))


def periodic_positional_encoding(x: jnp.ndarray,
                                 pe: jnp.ndarray,
                                 alpha: jnp.ndarray,
                                 *,
                                 target_block_bytes: int | None = None) -> jnp.ndarray:
    """x: [B, D, L]; pe: [1, D, period] float32; alpha: [1] f32 scalar parameter."""
    B, D, L = x.shape
    period = pe.shape[2]
    DL = D * L

    # get_pe: tile pe along Length to cover L, slice to L, flatten (D, L) -> D*L.
    # pe stays float32 (tiny, VMEM-resident) so low-precision inputs still get a
    # full-precision PE table; the kernel casts only at the store.
    reps = _cdiv(L, period)
    pe_row = jnp.tile(pe[0], (1, reps))[:, :L].astype(jnp.float32).reshape(1, DL)

    # Lane-dense view of x: collapse (D, L) into the lane dimension
    # (row-major reshape -> pure metadata change, no data movement).
    x2 = x.reshape(B, DL)

    tgt_default, vmem_limit, num_cores = _tpu_budget()
    tgt = target_block_bytes if target_block_bytes is not None else tgt_default
    tb, chunk, (grid_b, grid_l) = _plan_tiling(B, DL, x.dtype.itemsize, tgt, num_cores)

    out2 = pl.pallas_call(
        _ppe_kernel,
        out_shape=jax.ShapeDtypeStruct((B, DL), x.dtype),
        grid_spec=pltpu.PrefetchScalarGridSpec(
            num_scalar_prefetch=0,
            grid=(grid_b, grid_l),
            in_specs=[
                # alpha: tiny scalar parameter, keep in SMEM (untiled).
                pl.BlockSpec(memory_space=pltpu.SMEM),
                # x: (tb, chunk) blocks; ragged last blocks handled by Pallas.
                pl.BlockSpec((tb, chunk), lambda b, j: (b, j)),
                # pe: same lane chunk, constant along batch -> stays VMEM-resident.
                pl.BlockSpec((1, chunk), lambda b, j: (0, j)),
            ],
            out_specs=pl.BlockSpec((tb, chunk), lambda b, j: (b, j)),
        ),
        compiler_params=pltpu.CompilerParams(
            dimension_semantics=("parallel", "parallel"),
            # Generation-aware budget: 64 MiB on 128-MiB-VMEM parts (v5e/v6e),
            # 32 MiB on v7x.  Blocks are sized so 2x-buffered x + out (4 blocks)
            # plus the f32 pe chunk fit with headroom on every generation.
            vmem_limit_bytes=vmem_limit,
        ),
    )(alpha.astype(jnp.float32), x2, pe_row)

    # Dropout: eval-mode identity.
    # TODO(synk): optional input_output_aliases when the caller donates x, and a
    # plain-XLA path for sub-100-KiB inputs where launch overhead dominates.
    return out2.reshape(B, D, L)


if __name__ == "__main__":
    # Module config (small, deterministic).
    period = 16
    embedding_size = 32
    dropout_rate = 0.1  # eval-mode => identity

    pe = _build_pe(period, embedding_size)          # [1, E, period]
    alpha = jnp.ones((1,), dtype=jnp.float32)       # nn.Parameter(torch.ones(1))
    key = jax.random.PRNGKey(0)

    def ref_forward(x, pe, alpha):
        B, D, L = x.shape
        reps = _cdiv(L, pe.shape[2])
        pe_full = jnp.tile(pe[0], (1, reps))[:, :L]
        return (x.astype(jnp.float32) + alpha[0] * pe_full[None, :, :]).astype(x.dtype)

    # Case 1: demo shape [2, 32, 48] f32, default generation-aware tiling.
    x1 = jax.random.normal(key, (2, embedding_size, 48), dtype=jnp.float32)
    o1 = jax.block_until_ready(periodic_positional_encoding(x1, pe, alpha))
    assert o1.shape == x1.shape
    assert jnp.allclose(o1, ref_forward(x1, pe, alpha), atol=1e-6, rtol=1e-6)

    # Case 2: bf16 input, ragged batch tiling (B=44, tb=16 -> cdiv grid of 3),
    # f32 pe promotion with cast at the store.  Small forced block budget just
    # exercises the multi-block path at demo scale.
    x2 = jax.random.normal(jax.random.fold_in(key, 1),
                           (44, embedding_size, 48), dtype=jnp.bfloat16)
    o2 = jax.block_until_ready(
        periodic_positional_encoding(x2, pe, alpha, target_block_bytes=64 * 1024))
    assert jnp.allclose(o2.astype(jnp.float32),
                        ref_forward(x2, pe, alpha).astype(jnp.float32),
                        atol=1e-2, rtol=1e-2)

    # Case 3: lane-axis chunking path (row bytes exceed the forced block budget),
    # with a ragged last lane chunk (D*L = 1600 = 6*256 + 64).
    x3 = jax.random.normal(jax.random.fold_in(key, 2),
                           (4, embedding_size, 50), dtype=jnp.float32)
    o3 = jax.block_until_ready(
        periodic_positional_encoding(x3, pe, alpha, target_block_bytes=4 * 1024))
    assert jnp.allclose(o3, ref_forward(x3, pe, alpha), atol=1e-6, rtol=1e-6)

    print("KERNEL_OK")
</pallas_src>

<mosaic_0001>
module attributes {stable_mosaic.version = 11 : i64} {
  func.func @_ppe_kernel(%arg0: i32, %arg1: i32, %arg2: memref<1xf32, #tpu.memory_space<smem>>, %arg3: memref<2x1536xf32, #tpu.memory_space<vmem>>, %arg4: memref<1x1536xf32, #tpu.memory_space<vmem>>, %arg5: memref<2x1536xf32, #tpu.memory_space<vmem>>) attributes {dimension_semantics = [#tpu.dimension_semantics<parallel>, #tpu.dimension_semantics<parallel>], iteration_bounds = array<i64: 1, 1>, scalar_prefetch = 0 : i64, scratch_operands = 0 : i64, tpu.core_type = #tpu.core_type<tc>, window_params = [{transform_indices = @transform_0, window_bounds = array<i64: 1>}, {transform_indices = @transform_1, window_bounds = array<i64: 2, 1536>}, {transform_indices = @transform_2, window_bounds = array<i64: 1, 1536>}, {transform_indices = @transform_3, window_bounds = array<i64: 2, 1536>}]} {
    %c0 = arith.constant 0 : index
    %0 = memref.load %arg2[%c0] : memref<1xf32, #tpu.memory_space<smem>>
    %c0_0 = arith.constant 0 : index
    %c0_1 = arith.constant 0 : index
    %1 = vector.load %arg3[%c0_0, %c0_1] : memref<2x1536xf32, #tpu.memory_space<vmem>>, vector<2x1536xf32>
    %c0_2 = arith.constant 0 : index
    %c0_3 = arith.constant 0 : index
    %2 = vector.load %arg4[%c0_2, %c0_3] : memref<1x1536xf32, #tpu.memory_space<vmem>>, vector<1x1536xf32>
    %3 = vector.broadcast %0 : f32 to vector<1x1536xf32>
    %4 = arith.mulf %3, %2 : vector<1x1536xf32>
    %5 = vector.broadcast %4 : vector<1x1536xf32> to vector<2x1536xf32>
    %6 = arith.addf %1, %5 : vector<2x1536xf32>
    %c0_4 = arith.constant 0 : index
    %c0_5 = arith.constant 0 : index
    %7 = vector.load %arg5[%c0_4, %c0_5] : memref<2x1536xf32, #tpu.memory_space<vmem>>, vector<2x1536xf32>
    tpu.vector_store %arg5[%c0_4, %c0_5], %6 {strides = array<i32>} : memref<2x1536xf32, #tpu.memory_space<vmem>>, vector<2x1536xf32>,
    return
  }
  func.func @transform_0(%arg0: i32, %arg1: i32) -> i32 {
    %c0_i32 = arith.constant 0 : i32
    %c0_i32_0 = arith.constant 0 : i32
    return %c0_i32 : i32
  }
  func.func @transform_1(%arg0: i32, %arg1: i32) -> (i32, i32) {
    %c0_i32 = arith.constant 0 : i32
    return %arg0, %arg1 : i32, i32
  }
  func.func @transform_2(%arg0: i32, %arg1: i32) -> (i32, i32) {
    %c0_i32 = arith.constant 0 : i32
    %c0_i32_0 = arith.constant 0 : i32
    return %c0_i32, %arg1 : i32, i32
  }
  func.func @transform_3(%arg0: i32, %arg1: i32) -> (i32, i32) {
    %c0_i32 = arith.constant 0 : i32
    return %arg0, %arg1 : i32, i32
  }
}

</mosaic_0001>

<bundles_post_ra>
// kernel: tpu_custom_call.1
= control target key start
LH: loop header
LB: loop body
LE: loop exit
PB: predicated region body
PF: predicated region fallthrough
CT: control target
= control target key end

     0   :  { %9 = vsyncpa [#allocation4], 0  ;;  %s281_s0 = inlined_call_operand.<no memory space> [shape: f32[1], index: 0, kind: input, shape index: {}]   ;;  %s282_s1 = inlined_call_operand.hbm [shape: f32[2,1536], index: 1, kind: input, shape index: {}]   ;;  %s283_s2 = inlined_call_operand.hbm [shape: f32[1,1536], index: 2, kind: input, shape index: {}]   ;;  %s284_s3 = inlined_call_operand.hbm [shape: f32[2,1536], index: 3, kind: output, shape index: {}]  }
   0x1   :  { %10 = vsyncpa [#allocation7], 0 }
   0x2   :  { %11 = vsyncpa [#allocation5], 0  ;;  %s245_s12 = smov [#allocation3]   ;;  %s246_s14 = smov [#allocation6]  }
   0x3   :  { %s20_s13 = sshll.u32 %s245_s12, 4  ;;  %s30_s15 = sshll.u32 %s246_s14, 4  ;;  %s21_s13 = int_to_ptr.vmem [resolvable:$true] %s20_s13  ;;  %s31_s15 = int_to_ptr.vmem [resolvable:$true] %s30_s15 }
   0x4   :  { %s187_s16 = scalar_lea.vmem %s21_s13, 384  ;;  %p192_p1 = scmp.lt.s32.totalorder %s21_s13, %s21_s13 }
   0x5   :  { %p188_p0 = scmp.ne.s32.totalorder %s21_s13, %s187_s16  ;;  %p193_p2 = scmp.lt.s32.totalorder %s187_s16, %s187_s16 }
   0x7   :  { %p194_p3 = por %p193_p2, %p192_p1 }
   0x9   :  { %p195_p4 = pnand %p194_p3, %p188_p0 }
   0xb   :  { %198 = shalt.err (!%p195_p4)
}
   0xc   :  { %23 = dma.hbm_to_vmem [thread:$0]  %s282_s1, 384, %s21_s13, [#allocation4]  }
   0xd   :  { %s207_s19 = scalar_lea.vmem %s31_s15, 192  ;;  %p212_p6 = scmp.lt.s32.totalorder %s31_s15, %s31_s15 }
   0xe   :  { %p208_p5 = scmp.ne.s32.totalorder %s31_s15, %s207_s19  ;;  %p213_p7 = scmp.lt.s32.totalorder %s207_s19, %s207_s19 }
  0x10   :  { %p214_p8 = por %p213_p7, %p212_p6 }
  0x12   :  { %p215_p9 = pnand %p214_p8, %p208_p5 }
  0x14   :  { %218 = shalt.err (!%p215_p9)
}
  0x15   :  { %33 = dma.hbm_to_vmem [thread:$0]  %s283_s2, 192, %s31_s15, [#allocation7]  }
  0x16   :  { %239 = dma.done.wait [#allocation4], 384  }
  0x17   :  { %240 = vsyncadd [#allocation4], 4294966912 }
  0x18   :  { %241 = dma.done.wait [#allocation7], 192  }
  0x19   :  { %242 = vsyncadd [#allocation7], 4294967104  ;;  %v51_v0 = vlaneseq  ;;  %v247_v1 = vmov 1983009808   ;;  %v46_v4 = vstv %s281_s0  ;;  %v44_v10 = vld [vmem:[#allocation6] sm:$0xff]  ;;  %v41_v38 = vld [vmem:[#allocation3] sm:$0xff] }
  0x1a   :  { %v102_v2 = vunpack.c.l.s4 %v247_v1  ;;  %v47_v15 = vmul.f32 %v46_v4, %v44_v10  ;;  %v45_v16 = vld [vmem:[#allocation6 + $0x8] sm:$0xf]  ;;  %v42_v43 = vld [vmem:[#allocation3 + $0x8] sm:$0xff]  ;;  %v43_v48 = vld [vmem:[#allocation3 + $0x10] sm:$0xff]  ;;  %s248_s0 = smov [#allocation8]  }
  0x1b   :  { %v52_v3 = vshrl.u32 %v51_v0, 7  ;;  %v48_v18 = vmul.f32 %v46_v4, %v45_v16  ;;  %s165_s2 = sshll.u32 %s248_s0, 4  ;;  %s166_s2 = int_to_ptr.vmem [resolvable:$true] %s165_s2 }
  0x1c   :  { %v103_v5 = vunpack.c.0.s8 %v102_v2  ;;  %s219_s23 = scalar_lea.vmem %s166_s2, 384  ;;  %p224_p11 = scmp.lt.s32.totalorder %s166_s2, %s166_s2 }
  0x1d   :  { %v53_v6 = vsub.s32 0, %v52_v3  ;;  %v57_v7 = vsub.s32 1, %v52_v3  ;;  %v61_v8 = vsub.s32 2, %v52_v3  ;;  %v65_v9 = vsub.s32 3, %v52_v3  ;;  %p220_p10 = scmp.ne.s32.totalorder %s166_s2, %s219_s23  ;;  %p225_p12 = scmp.lt.s32.totalorder %s219_s23, %s219_s23 }
  0x1e   :  { %v69_v11 = vsub.s32 4, %v52_v3  ;;  %v73_v12 = vsub.s32 5, %v52_v3  ;;  %v77_v13 = vsub.s32 6, %v52_v3  ;;  %v81_v14 = vsub.s32 7, %v52_v3 }
  0x1f   :  { %v106_v17 = vsub.s32 %v103_v5, %v52_v3  ;;  %v54_v19 = vrot.slane %v47_v15, %v53_v6  ;;  %v58_v20 = vrot.slane %v47_v15, %v57_v7  ;;  %v62_v21 = vrot.slane %v47_v15, %v61_v8  ;;  %p226_p13 = por %p225_p12, %p224_p11 }
  0x20   :  { %v66_v22 = vrot.slane %v47_v15, %v65_v9  ;;  %v70_v23 = vrot.slane %v47_v15, %v69_v11  ;;  %v74_v24 = vrot.slane %v47_v15, %v73_v12  ;;  %v78_v25 = vrot.slane %v47_v15, %v77_v13 }
  0x21   :  { %v82_v26 = vrot.slane %v47_v15, %v81_v14  ;;  %v99_v27 = vcombine.low %v54_v19, %v58_v20  ;;  %v86_v29 = vrot.slane %v48_v18, %v53_v6  ;;  %v90_v30 = vrot.slane %v48_v18, %v57_v7  ;;  %p227_p0 = pnand %p226_p13, %p220_p10 }
  0x22   :  { %v100_v28 = vcombine.low %v62_v21, %v66_v22  ;;  %v116_v31 = vcombine.low %v70_v23, %v74_v24  ;;  %v94_v33 = vrot.slane %v48_v18, %v61_v8  ;;  %v98_v34 = vrot.slane %v48_v18, %v65_v9 }
  0x23   :  { %v117_v32 = vcombine.low %v78_v25, %v82_v26  ;;  %v107_v35 = vrot.slane %v99_v27, %v106_v17  ;;  %v133_v37 = vcombine.low %v86_v29, %v90_v30 }
  0x24   :  { %v114_v36 = vrot.slane %v100_v28, %v106_v17  ;;  %v124_v39 = vrot.slane %v116_v31, %v106_v17  ;;  %v134_v41 = vcombine.low %v94_v33, %v98_v34 }
  0x25   :  { %v131_v40 = vrot.slane %v117_v32, %v106_v17  ;;  %v141_v44 = vrot.slane %v133_v37, %v106_v17 }
  0x26   :  { %v115_v42 = vcombine.low %v107_v35, %v114_v36  ;;  %v148_v46 = vrot.slane %v134_v41, %v106_v17 }
  0x27   :  { %v132_v45 = vcombine.low %v124_v39, %v131_v40 }
  0x28   :  { %v153_v47 = vadd.f32 %v115_v42, %v41_v38  ;;  %v149_v50 = vcombine.low %v141_v44, %v148_v46 }
  0x29   :  { %v154_v49 = vadd.f32 %v132_v45, %v42_v43 }
  0x2a   :  { %156 = vst [vmem:[#allocation8] sm:$0xff] %v153_v47  ;;  %v155_v51 = vadd.f32 %v149_v50, %v43_v48 }
  0x2b   :  { %157 = vst [vmem:[#allocation8 + $0x8] sm:$0xff] %v154_v49 }
  0x2c   :  { %158 = vst [vmem:[#allocation8 + $0x10] sm:$0xff] %v155_v51 }
  0x2d   :  { %230 = shalt.err (!%p227_p0)
}
  0x2e   :  { %168 = dma.vmem_to_hbm [thread:$0]  %s166_s2, 384, %s284_s3, [#allocation5]  }
  0x2f   :  { %243 = dma.done.wait [#allocation5], 384  }
  0x30   :  { %244 = vsyncadd [#allocation5], 4294966912 }
  0x31   :  { %172 = vsyncpa [#allocation4], 1 }
  0x32   :  { %173 = vsyncpa [#allocation7], 1 }
  0x33   :  { %174 = vsyncpa [#allocation5], 1 }

</bundles_post_ra>
